<compile_context>
chip_gen: v7x
topology: tpu7x:2x2x1
jax: 0.10.0
libtpu: 0.0.40
codegen_flags: <defaults>
</compile_context>

<pallas_src>
import functools

import jax
import jax.numpy as jnp
from jax import lax
from jax.experimental import pallas as pl
from jax.experimental.pallas import tpu as pltpu


# --------------------------- hardware-aware sizing ---------------------------
def _vmem_capacity_bytes():
    try:
        info = pltpu.get_tpu_info()
        cap = getattr(info, "vmem_capacity_bytes", None)
        if cap:
            return int(cap)
    except Exception:
        pass
    return 64 << 20            # conservative default (v7x per-core VMEM)


def _pick_tiles(C, HW, itemsize, block_budget):
    """Pick (tc, th) channel / HW tile sizes satisfying the (8,128) block rule.

    tc is a divisor of C that is a multiple of the sublane packing factor
    (8 f32 / 16 bf16 / 32 int8) or C itself; th is a divisor of HW that is a
    multiple of 128 or HW itself."""
    pack = 8 * max(1, 4 // int(itemsize))
    tc_opts = sorted({t for t in range(pack, C + 1, pack) if C % t == 0} | {C})
    th_opts = sorted({t for t in range(128, HW + 1, 128) if HW % t == 0} | {HW})

    best = None
    for t in tc_opts:                        # largest tc with full-HW blocks
        if t * HW * itemsize <= block_budget:
            best = (t, HW)
    if best is not None:
        return best
    tc = tc_opts[0]                          # smallest legal tc, tile HW instead
    th = th_opts[0]
    for t in th_opts:
        if tc * t * itemsize <= block_budget:
            th = max(th, t)
    return tc, th


# ------------------------------ Pallas kernels -------------------------------
def _resident_loss_kernel(s_ref, t_ref, m_ref, out_ref, *, w_fg, w_bg, inv_n):
    # Everything VMEM-resident: single fetch, both "passes" done in place.
    d = jnp.abs(t_ref[...].astype(jnp.float32) - s_ref[...].astype(jnp.float32))
    m = m_ref[...]                               # (B, 1, HW) f32, broadcast over C
    sum_fg = jnp.sum(m * d)
    sum_all = jnp.sum(d)
    thr = (sum_all - sum_fg) * inv_n             # global mean of loss_bg
    lbg = (1.0 - m) * d
    sum_bg = jnp.sum(jnp.where(lbg < thr, 0.0, lbg))
    out_ref[0, 0] = (w_fg * sum_fg + w_bg * sum_bg) * inv_n


def _partial_sums_kernel(s_ref, t_ref, m_ref, out_ref):
    # Streaming pass 0: per-(b, c-tile) sums of |d| and m*|d|, accumulated over
    # the HW-tile axis, written as a lane-dense (8,128) tile:
    #   sublane 0 = fg sum, sublane 1 = total sum.
    h = pl.program_id(2)

    @pl.when(h == 0)
    def _():
        out_ref[...] = jnp.zeros_like(out_ref)

    d = jnp.abs(t_ref[...].astype(jnp.float32) - s_ref[...].astype(jnp.float32))
    m = m_ref[...]                               # (1, 1, th), broadcast over tc
    sum_fg = jnp.sum(m * d)
    sum_all = jnp.sum(d)
    row = lax.broadcasted_iota(jnp.int32, (1, 1, 8, 128), 2)
    out_ref[...] += jnp.where(
        row == 0, sum_fg, jnp.where(row == 1, sum_all, 0.0)).astype(jnp.float32)


def _bg_threshold_kernel(thr_ref, s_ref, t_ref, m_ref, out_ref):
    # Streaming pass 1: per-tile sum of the thresholded background term.
    h = pl.program_id(2)

    @pl.when(h == 0)
    def _():
        out_ref[...] = jnp.zeros_like(out_ref)

    thr = thr_ref[0]                             # global mean(loss_bg), SMEM scalar
    d = jnp.abs(t_ref[...].astype(jnp.float32) - s_ref[...].astype(jnp.float32))
    lbg = (1.0 - m_ref[...]) * d
    part = jnp.sum(jnp.where(lbg < thr, 0.0, lbg))
    row = lax.broadcasted_iota(jnp.int32, (1, 1, 8, 128), 2)
    out_ref[...] += jnp.where(row == 0, part, 0.0).astype(jnp.float32)


# ------------------------- Fg_mask_generator (glue) --------------------------
# TODO(synk): the per-target Python rasterization loop of the original module
# is data-dependent / variable-length; it is implemented as vectorized JAX
# outside the Pallas kernel rather than inside it.
def fg_mask_generator(x_shape, targets, r=10):
    """Vectorized JAX port of mask_loss.Fg_mask_generator.

    targets: (N, 6) float32 rows of [img_idx, class, x, y, w, h] (normalized).
    Returns mask_fg of shape (B, H*W) float32 (channel dim implicit)."""
    B, C, H, W = x_shape
    img = targets[:, 0].astype(jnp.int32)
    cx = targets[:, 2] * W
    cy = targets[:, 3] * H
    bw = targets[:, 4] * W
    bh = targets[:, 5] * H

    r_w = jnp.floor(bw / r)
    r_w = jnp.where(r_w == 0, 1.0, r_w)
    r_h = jnp.floor(bh / r)
    r_h = jnp.where(r_h == 0, 1.0, r_h)

    bx1 = cx - bw / 2.0
    by1 = cy - bh / 2.0
    bx2 = cx + bw / 2.0
    by2 = cy + bh / 2.0

    x1 = jnp.where(bx1 - r_w > 0, jnp.floor(bx1) - r_w, 0.0)
    y1 = jnp.where(by1 - r_h > 0, jnp.floor(by1) - r_h, 0.0)
    x2 = jnp.where(bx2 + r_w < W, jnp.ceil(bx2) + r_w, float(W))
    y2 = jnp.where(by2 + r_h < H, jnp.ceil(by2) + r_h, float(H))

    ys = jnp.arange(H, dtype=jnp.float32)[None, :, None]           # (1, H, 1)
    xs = jnp.arange(W, dtype=jnp.float32)[None, None, :]           # (1, 1, W)
    in_box = ((ys >= y1[:, None, None]) & (ys < y2[:, None, None]) &
              (xs >= x1[:, None, None]) & (xs < x2[:, None, None]))  # (N, H, W)

    n_box = in_box.shape[0]
    covered = jax.ops.segment_sum(
        in_box.reshape(n_box, H * W).astype(jnp.float32), img, num_segments=B)
    return (covered > 0).astype(jnp.float32)                        # (B, H*W)


# --------------------------------- wrapper ------------------------------------
def mask_loss_forward(fea_s, fea_t, target, w_fg=0.02, w_bg=0.01, r=10,
                      force_streaming=False):
    B, C, H, W = fea_s.shape
    HW = H * W
    itemsize = jnp.dtype(fea_s.dtype).itemsize
    inv_n = 1.0 / float(B * C * HW)

    mask3d = fg_mask_generator((B, C, H, W), target, r=r).reshape(B, 1, HW)
    s3d = fea_s.reshape(B, C, HW)
    t3d = fea_t.reshape(B, C, HW)

    vmem_cap = _vmem_capacity_bytes()
    ceiling = (vmem_cap * 3) // 4               # ~48 MiB v7x, ~96 MiB v5e/v6e

    # ------------------------ VMEM-resident fast path -------------------------
    fea_elems = B * C * HW
    resident_bytes = (2 * fea_elems * itemsize       # s, t (native dtype)
                      + 3 * fea_elems * 4            # f32 working set (d, lbg, ...)
                      + B * HW * 4)                  # mask
    if (not force_streaming) and resident_bytes + (4 << 20) <= (vmem_cap * 3) // 5:
        kernel = functools.partial(_resident_loss_kernel, w_fg=float(w_fg),
                                   w_bg=float(w_bg), inv_n=inv_n)
        out = pl.pallas_call(
            kernel,
            out_shape=jax.ShapeDtypeStruct((1, 1), jnp.float32),
            in_specs=[pl.BlockSpec(memory_space=pltpu.MemorySpace.VMEM)] * 3,
            out_specs=pl.BlockSpec(memory_space=pltpu.MemorySpace.SMEM),
            compiler_params=pltpu.CompilerParams(
                vmem_limit_bytes=int(min(ceiling,
                                         max(16 << 20, resident_bytes + (4 << 20))))),
        )(s3d, t3d, mask3d)
        return out[0, 0]

    # ----------------------------- streaming path ------------------------------
    block_budget = max(2 << 20, min(8 << 20, ceiling // 6))
    tc, th = _pick_tiles(C, HW, itemsize, block_budget)
    n_ct, n_ht = C // tc, HW // th

    block_bytes = tc * th * itemsize
    vmem_limit = int(max(16 << 20,
                         min(ceiling, 4 * block_bytes + 4 * th * 4 + (4 << 20))))

    feat_spec = pl.BlockSpec((1, tc, th), lambda b, c, h: (b, c, h))
    mask_spec = pl.BlockSpec((1, 1, th), lambda b, c, h: (b, 0, h))
    part_spec = pl.BlockSpec((1, 1, 8, 128), lambda b, c, h: (b, c, 0, 0))
    part_shape = jax.ShapeDtypeStruct((B, n_ct, 8, 128), jnp.float32)
    cparams = pltpu.CompilerParams(
        dimension_semantics=("parallel", "parallel", "arbitrary"),
        vmem_limit_bytes=vmem_limit)

    # Pass 0: raw partial sums -> global background threshold (combined in JAX).
    p0 = pl.pallas_call(
        _partial_sums_kernel,
        out_shape=part_shape,
        grid=(B, n_ct, n_ht),
        in_specs=[feat_spec, feat_spec, mask_spec],
        out_specs=part_spec,
        compiler_params=cparams,
    )(s3d, t3d, mask3d)
    sum_fg = jnp.sum(p0[:, :, 0, 0])
    sum_all = jnp.sum(p0[:, :, 1, 0])
    thr = ((sum_all - sum_fg) * inv_n).reshape((1,)).astype(jnp.float32)

    # Pass 1: thresholded background partial sums (thr passed through SMEM).
    p1 = pl.pallas_call(
        _bg_threshold_kernel,
        out_shape=part_shape,
        grid=(B, n_ct, n_ht),
        in_specs=[pl.BlockSpec(memory_space=pltpu.MemorySpace.SMEM),
                  feat_spec, feat_spec, mask_spec],
        out_specs=part_spec,
        compiler_params=cparams,
    )(thr, s3d, t3d, mask3d)
    sum_bg_thr = jnp.sum(p1[:, :, 0, 0])

    return (w_fg * sum_fg + w_bg * sum_bg_thr) * inv_n


# ----------------------------- pure-JAX reference ------------------------------
def _ref_loss(fea_s, fea_t, mask_fg, w_fg, w_bg):
    mask_bg = 1.0 - mask_fg
    la = jnp.abs(fea_t - fea_s)
    lbg = mask_bg * la
    lbg = jnp.where(lbg < jnp.mean(lbg), 0.0, lbg)
    lfg = mask_fg * la
    return jnp.mean(w_fg * lfg + w_bg * lbg)


if __name__ == "__main__":
    B, C, H, W = 2, 4, 16, 16
    key = jax.random.PRNGKey(0)
    k1, k2 = jax.random.split(key)
    fea_s = jax.random.normal(k1, (B, C, H, W), dtype=jnp.float32)
    fea_t = jax.random.normal(k2, (B, C, H, W), dtype=jnp.float32)

    # YOLO-style targets: [img_idx, class, x, y, w, h] (normalized coords)
    target = jnp.array(
        [[0.0, 0.0, 0.50, 0.50, 0.40, 0.30],
         [0.0, 1.0, 0.20, 0.30, 0.20, 0.20],
         [1.0, 0.0, 0.70, 0.60, 0.50, 0.50]],
        dtype=jnp.float32)

    # Fast (VMEM-resident) path and streaming (two-call) path are both exercised.
    loss_fast = jax.block_until_ready(
        mask_loss_forward(fea_s, fea_t, target, w_fg=0.02, w_bg=0.01, r=10))
    loss_stream = jax.block_until_ready(
        mask_loss_forward(fea_s, fea_t, target, w_fg=0.02, w_bg=0.01, r=10,
                          force_streaming=True))

    mask_ref = fg_mask_generator((B, C, H, W), target, r=10).reshape(B, 1, H, W)
    ref = _ref_loss(fea_s, fea_t, mask_ref, 0.02, 0.01)

    assert jnp.allclose(loss_fast, ref, rtol=1e-4, atol=1e-6), (loss_fast, ref)
    assert jnp.allclose(loss_stream, ref, rtol=1e-4, atol=1e-6), (loss_stream, ref)
    print("KERNEL_OK")
</pallas_src>

<mosaic_0001>
module attributes {stable_mosaic.version = 11 : i64} {
  func.func @_resident_loss_kernel(%arg0: memref<2x4x256xf32, #tpu.memory_space<vmem>>, %arg1: memref<2x4x256xf32, #tpu.memory_space<vmem>>, %arg2: memref<2x1x256xf32, #tpu.memory_space<vmem>>, %arg3: memref<1x1xf32, #tpu.memory_space<smem>>) attributes {dimension_semantics = [], scalar_prefetch = 0 : i64, scratch_operands = 0 : i64, tpu.core_type = #tpu.core_type<tc>} {
    %c0 = arith.constant 0 : index
    %c0_0 = arith.constant 0 : index
    %c0_1 = arith.constant 0 : index
    %0 = vector.load %arg1[%c0, %c0_0, %c0_1] : memref<2x4x256xf32, #tpu.memory_space<vmem>>, vector<2x4x256xf32>
    %c0_2 = arith.constant 0 : index
    %c0_3 = arith.constant 0 : index
    %c0_4 = arith.constant 0 : index
    %1 = vector.load %arg0[%c0_2, %c0_3, %c0_4] : memref<2x4x256xf32, #tpu.memory_space<vmem>>, vector<2x4x256xf32>
    %2 = arith.subf %0, %1 : vector<2x4x256xf32>
    %3 = math.absf %2 : vector<2x4x256xf32>
    %c0_5 = arith.constant 0 : index
    %c0_6 = arith.constant 0 : index
    %c0_7 = arith.constant 0 : index
    %4 = vector.load %arg2[%c0_5, %c0_6, %c0_7] : memref<2x1x256xf32, #tpu.memory_space<vmem>>, vector<2x1x256xf32>
    %5 = vector.broadcast %4 : vector<2x1x256xf32> to vector<2x4x256xf32>
    %6 = arith.mulf %5, %3 : vector<2x4x256xf32>
    %7 = vector.shape_cast %6 : vector<2x4x256xf32> to vector<1x2x4x256xf32>
    %cst = arith.constant dense<0.000000e+00> : vector<1xf32>
    %8 = vector.multi_reduction <add>, %7, %cst [1, 2, 3] : vector<1x2x4x256xf32> to vector<1xf32>
    %9 = vector.shape_cast %8 : vector<1xf32> to vector<1x1x1x1xf32>
    %10 = vector.extract %9[0, 0, 0, 0] : f32 from vector<1x1x1x1xf32>
    %11 = vector.shape_cast %3 : vector<2x4x256xf32> to vector<1x2x4x256xf32>
    %cst_8 = arith.constant dense<0.000000e+00> : vector<1xf32>
    %12 = vector.multi_reduction <add>, %11, %cst_8 [1, 2, 3] : vector<1x2x4x256xf32> to vector<1xf32>
    %13 = vector.shape_cast %12 : vector<1xf32> to vector<1x1x1x1xf32>
    %14 = vector.extract %13[0, 0, 0, 0] : f32 from vector<1x1x1x1xf32>
    %15 = arith.subf %14, %10 : f32
    %cst_9 = arith.constant 4.8828125E-4 : f32
    %16 = arith.mulf %15, %cst_9 : f32
    %cst_10 = arith.constant 1.000000e+00 : f32
    %17 = vector.broadcast %cst_10 : f32 to vector<2x1x256xf32>
    %18 = arith.subf %17, %4 : vector<2x1x256xf32>
    %19 = vector.broadcast %18 : vector<2x1x256xf32> to vector<2x4x256xf32>
    %20 = arith.mulf %19, %3 : vector<2x4x256xf32>
    %21 = vector.broadcast %16 : f32 to vector<2x4x256xf32>
    %22 = arith.cmpf olt, %20, %21 : vector<2x4x256xf32>
    %cst_11 = arith.constant 0.000000e+00 : f32
    %23 = vector.broadcast %cst_11 : f32 to vector<2x4x256xf32>
    %24 = arith.select %22, %23, %20 : vector<2x4x256xi1>, vector<2x4x256xf32>
    %25 = vector.shape_cast %24 : vector<2x4x256xf32> to vector<1x2x4x256xf32>
    %cst_12 = arith.constant dense<0.000000e+00> : vector<1xf32>
    %26 = vector.multi_reduction <add>, %25, %cst_12 [1, 2, 3] : vector<1x2x4x256xf32> to vector<1xf32>
    %27 = vector.shape_cast %26 : vector<1xf32> to vector<1x1x1x1xf32>
    %28 = vector.extract %27[0, 0, 0, 0] : f32 from vector<1x1x1x1xf32>
    %cst_13 = arith.constant 2.000000e-02 : f32
    %29 = arith.mulf %cst_13, %10 : f32
    %cst_14 = arith.constant 0.00999999977 : f32
    %30 = arith.mulf %cst_14, %28 : f32
    %31 = arith.addf %29, %30 : f32
    %cst_15 = arith.constant 4.8828125E-4 : f32
    %32 = arith.mulf %31, %cst_15 : f32
    %c0_16 = arith.constant 0 : index
    %c0_17 = arith.constant 0 : index
    %33 = memref.load %arg3[%c0_16, %c0_17] : memref<1x1xf32, #tpu.memory_space<smem>>
    memref.store %32, %arg3[%c0_16, %c0_17] : memref<1x1xf32, #tpu.memory_space<smem>>
    return
  }
}

</mosaic_0001>

<bundles_post_ra>
// kernel: tpu_custom_call.1
= control target key start
LH: loop header
LB: loop body
LE: loop exit
PB: predicated region body
PF: predicated region fallthrough
CT: control target
= control target key end

     0   :  { %8 = vsyncpa [#allocation3], 0  ;;  %s348_s0 = inlined_call_operand.hbm [shape: f32[2,4,256], index: 0, kind: input, shape index: {}]   ;;  %s349_s1 = inlined_call_operand.hbm [shape: f32[2,4,256], index: 1, kind: input, shape index: {}]   ;;  %s350_s2 = inlined_call_operand.vmem [shape: f32[2,1,256], index: 2, kind: input, shape index: {}]   ;;  %s351_s3 = inlined_call_operand.hbm [shape: f32[1,1], index: 3, kind: output, shape index: {}]  }
   0x1   :  { %9 = vsyncpa [#allocation6], 0 }
   0x2   :  { %10 = vsyncpa [#allocation4], 0  ;;  %s265_s12 = smov [#allocation2]   ;;  %s205_s16 = scalar_lea.hbm %s348_s0, 256 }
   0x3   :  { %s16_s13 = sshll.u32 %s265_s12, 4  ;;  %p206_p0 = scmp.ne.s32.totalorder %s348_s0, %s205_s16  ;;  %s17_s13 = int_to_ptr.vmem [resolvable:$true] %s16_s13 }
   0x4   :  { %p209_p1 = scmp.lt.u32.totalorder %s205_s16, %s348_s0 }
   0x6   :  { %p211_p2 = pnand %p209_p1, %p206_p0 }
   0x8   :  { %214 = shalt.err (!%p211_p2)
}
   0x9   :  { %s215_s21 = scalar_lea.vmem %s17_s13, 256  ;;  %p220_p4 = scmp.lt.s32.totalorder %s17_s13, %s17_s13 }
   0xa   :  { %p216_p3 = scmp.ne.s32.totalorder %s17_s13, %s215_s21  ;;  %p221_p5 = scmp.lt.s32.totalorder %s215_s21, %s215_s21 }
   0xc   :  { %p222_p6 = por %p221_p5, %p220_p4 }
   0xe   :  { %p223_p7 = pnand %p222_p6, %p216_p3 }
  0x10   :  { %226 = shalt.err (!%p223_p7)
}
  0x11   :  { %s266_s22 = smov 128   ;;  %s267_s23 = smov 8  }
  0x12   :  { %22 = dma.hbm_to_vmem [thread:$0]  %s348_s0, 256, %s17_s13, [#allocation3], %s266_s22, %s266_s22, %s267_s23  }
  0x13   :  { %s268_s26 = smov [#allocation5]   ;;  %s227_s30 = scalar_lea.hbm %s349_s1, 256 }
  0x14   :  { %s28_s27 = sshll.u32 %s268_s26, 4  ;;  %p228_p8 = scmp.ne.s32.totalorder %s349_s1, %s227_s30  ;;  %s29_s27 = int_to_ptr.vmem [resolvable:$true] %s28_s27 }
  0x15   :  { %p231_p9 = scmp.lt.u32.totalorder %s227_s30, %s349_s1 }
  0x17   :  { %p233_p10 = pnand %p231_p9, %p228_p8 }
  0x19   :  { %236 = shalt.err (!%p233_p10)
}
  0x1a   :  { %s237_s8 = scalar_lea.vmem %s29_s27, 256  ;;  %p242_p12 = scmp.lt.s32.totalorder %s29_s27, %s29_s27 }
  0x1b   :  { %p238_p11 = scmp.ne.s32.totalorder %s29_s27, %s237_s8  ;;  %p243_p13 = scmp.lt.s32.totalorder %s237_s8, %s237_s8 }
  0x1d   :  { %p244_p0 = por %p243_p13, %p242_p12 }
  0x1f   :  { %p245_p1 = pnand %p244_p0, %p238_p11 }
  0x21   :  { %248 = shalt.err (!%p245_p1)
}
  0x22   :  { %34 = dma.hbm_to_vmem [thread:$0]  %s349_s1, 256, %s29_s27, [#allocation6], %s266_s22, %s266_s22, %s267_s23  }
  0x23   :  { %259 = dma.done.wait [#allocation3], 256  }
  0x24   :  { %260 = vsyncadd [#allocation3], 4294967040 }
  0x25   :  { %261 = dma.done.wait [#allocation6], 256  }
  0x26   :  { %262 = vsyncadd [#allocation6], 4294967040  ;;  %v55_v0 = vlaneseq  ;;  %v43_v4 = vld [vmem:[#allocation5] sm:$0xff]  ;;  %v44_v5 = vld [vmem:[#allocation5 + $0x8] sm:$0xff]  ;;  %vm85_vm0 = vcmask 1043456   ;;  %s249_s23 = scalar_lea.hbm %s351_s3, 16 }
  0x27   :  { %v45_v6 = vld [vmem:[#allocation2] sm:$0xff]  ;;  %v46_v7 = vld [vmem:[#allocation2 + $0x8] sm:$0xff]  ;;  %p250_p2 = scmp.ne.s32.totalorder %s351_s3, %s249_s23  ;;  %p253_p3 = scmp.lt.u32.totalorder %s249_s23, %s351_s3 }
  0x28   :  { %v56_v1 = vshrl.u32 %v55_v0, 7  ;;  %v47_v8 = vsub.f32 %v43_v4, %v45_v6  ;;  %v51_v9 = vld [vmem:[%s350_s2] sm:$0x3]  ;;  %v52_v10 = vld [vmem:[%s350_s2 + $0x2] sm:$0x3]  ;;  %v48_v11 = vsub.f32 %v44_v5, %v46_v7 }
  0x29   :  { %v120_v52 = vsub.f32 1.0, %v51_v9  ;;  %v121_v53 = vsub.f32 1.0, %v52_v10  ;;  %p255_p4 = pnand %p253_p3, %p250_p2 }
  0x2a   :  { %v57_v2 = vsub.s32 0, %v56_v1  ;;  %v61_v3 = vsub.s32 1, %v56_v1  ;;  %v49_v14 = vand.u32 2147483647, %v47_v8  ;;  %v50_v16 = vand.u32 2147483647, %v48_v11 }
  0x2c   :  { %v58_v12 = vrot.slane %v51_v9, %v57_v2  ;;  %v66_v13 = vrot.slane %v52_v10, %v57_v2  ;;  %v62_v15 = vrot.slane %v51_v9, %v61_v3  ;;  %v70_v17 = vrot.slane %v52_v10, %v61_v3 }
  0x2d   :  { %v77_v18 = vcombine.high %v49_v14, %v49_v14  ;;  %v102_v20 = vsel %vm85_vm0, %v49_v14, 0.0  ;;  %v78_v21 = vcombine.high %v50_v16, %v50_v16  ;;  %v105_v30 = vsel %vm85_vm0, %v50_v16, 0.0 }
  0x2e   :  { %v81_v19 = vmul.f32 %v58_v12, %v49_v14  ;;  %v83_v22 = vmul.f32 %v66_v13, %v50_v16  ;;  %v127_v54 = vrot.slane %v120_v52, %v57_v2  ;;  %v131_v55 = vrot.slane %v120_v52, %v61_v3 }
  0x2f   :  { %v82_v23 = vmul.f32 %v77_v18, %v62_v15  ;;  %v103_v25 = vsel %vm85_vm0, %v77_v18, 0.0  ;;  %v84_v26 = vmul.f32 %v78_v21, %v70_v17  ;;  %v107_v35 = vsel %vm85_vm0, %v78_v21, 0.0 }
  0x30   :  { %v86_v24 = vsel %vm85_vm0, %v81_v19, 0.0  ;;  %v104_v27 = vadd.f32 %v103_v25, %v102_v20  ;;  %v89_v29 = vsel %vm85_vm0, %v83_v22, 0.0  ;;  %v135_v56 = vrot.slane %v121_v53, %v57_v2 }
  0x31   :  { %v87_v28 = vsel %vm85_vm0, %v82_v23, 0.0  ;;  %v91_v32 = vsel %vm85_vm0, %v84_v26, 0.0  ;;  %v139_v57 = vrot.slane %v121_v53, %v61_v3  ;;  %v144_v58 = vmul.f32 %v127_v54, %v49_v14 }
  0x32   :  { %v88_v31 = vadd.f32 %v87_v28, %v86_v24  ;;  %v106_v34 = vadd.f32 %v105_v30, %v104_v27  ;;  %v145_v59 = vmul.f32 %v131_v55, %v77_v18  ;;  %v146_v60 = vmul.f32 %v135_v56, %v50_v16 }
  0x33   :  { %v147_v61 = vmul.f32 %v139_v57, %v78_v21 }
  0x34   :  { %v90_v33 = vadd.f32 %v89_v29, %v88_v31  ;;  %v108_v37 = vadd.f32 %v107_v35, %v106_v34 }
  0x36   :  { %v92_v36 = vadd.f32 %v91_v32, %v90_v33 }
  0x38   :  { %93 = vadd.xlane.f32.xlu0 %v92_v36 }
  0x3c   :  { %109 = vadd.xlane.f32.xlu0 %v108_v37 }
  0xc5   :  { %v94_v38 = vpop.xlane.xlu0 %93 }
  0xc6   :  { %v95_v39 = vrot.slane %v94_v38, 4 }
  0xc8   :  { %v96_v40 = vadd.f32 %v95_v39, %v94_v38 }
  0xc9   :  { %v110_v41 = vpop.xlane.xlu0 %109 }
  0xca   :  { %v97_v42 = vrot.slane %v96_v40, 2  ;;  %v111_v43 = vrot.slane %v110_v41, 4 }
  0xcc   :  { %v112_v44 = vadd.f32 %v111_v43, %v110_v41  ;;  %v98_v45 = vadd.f32 %v97_v42, %v96_v40 }
  0xce   :  { %v113_v46 = vrot.slane %v112_v44, 2  ;;  %v99_v47 = vrot.slane %v98_v45, 1 }
  0xd0   :  { %v114_v48 = vadd.f32 %v113_v46, %v112_v44  ;;  %v100_v49 = vadd.f32 %v99_v47, %v98_v45 }
  0xd2   :  { %194 = vpush %v100_v49  ;;  %v115_v50 = vrot.slane %v114_v48, 1 }
  0xd4   :  { %v116_v51 = vadd.f32 %v115_v50, %v114_v48 }
  0xd6   :  { %196 = vpush %v116_v51 }
 0x103   :  { %s328_s1 = spop %194 }
 0x104   :  { %s173_s16 = smul.f32 0.02, %s328_s1 }
 0x107   :  { %s197_s2 = spop %196 }
 0x108   :  { %s118_s14 = ssub.f32 %s197_s2, %s328_s1 }
 0x10a   :  { %s119_s15 = smul.f32 0.00048828125, %s118_s14 }
 0x10c   :  { %v148_v62 = vstv %s119_s15 }
 0x10d   :  { %vm149_vm1 = vcmp.lt.f32.partialorder %v144_v58, %v148_v62  ;;  %vm150_vm2 = vcmp.lt.f32.partialorder %v145_v59, %v148_v62  ;;  %vm151_vm3 = vcmp.lt.f32.partialorder %v146_v60, %v148_v62  ;;  %vm152_vm4 = vcmp.lt.f32.partialorder %v147_v61, %v148_v62 }
 0x10e   :  { %v153_v63 = vsel %vm149_vm1, 0.0, %v144_v58  ;;  %v154_v0 = vsel %vm150_vm2, 0.0, %v145_v59  ;;  %v155_v1 = vsel %vm151_vm3, 0.0, %v146_v60  ;;  %v156_v4 = vsel %vm152_vm4, 0.0, %v147_v61 }
 0x10f   :  { %v157_v2 = vsel %vm85_vm0, %v153_v63, 0.0  ;;  %v158_v3 = vsel %vm85_vm0, %v154_v0, 0.0  ;;  %v160_v6 = vsel %vm85_vm0, %v155_v1, 0.0  ;;  %v162_v8 = vsel %vm85_vm0, %v156_v4, 0.0 }
 0x110   :  { %v159_v5 = vadd.f32 %v158_v3, %v157_v2 }
 0x112   :  { %v161_v7 = vadd.f32 %v160_v6, %v159_v5 }
 0x114   :  { %v163_v9 = vadd.f32 %v162_v8, %v161_v7 }
 0x116   :  { %164 = vadd.xlane.f32.xlu1 %v163_v9 }
 0x1a3   :  { %v165_v10 = vpop.xlane.xlu1 %164 }
 0x1a4   :  { %v166_v11 = vrot.slane %v165_v10, 4 }
 0x1a6   :  { %v167_v12 = vadd.f32 %v166_v11, %v165_v10 }
 0x1a8   :  { %v168_v13 = vrot.slane %v167_v12, 2 }
 0x1aa   :  { %v169_v14 = vadd.f32 %v168_v13, %v167_v12 }
 0x1ac   :  { %v170_v15 = vrot.slane %v169_v14, 1 }
 0x1ae   :  { %v171_v16 = vadd.f32 %v170_v15, %v169_v14 }
 0x1b0   :  { %198 = vpush %v171_v16 }
 0x1e1   :  { %s199_s17 = spop %198 }
 0x1e2   :  { %s174_s18 = smul.f32 0.01, %s199_s17 }
 0x1e4   :  { %s175_s19 = sadd.f32 %s174_s18, %s173_s16 }
 0x1e6   :  { %s176_s20 = smul.f32 0.00048828125, %s175_s19 }
 0x1e8   :  { %178 = sst [smem:[#allocation7]] %s176_s20 }
 0x1e9   :  { %258 = shalt.err (!%p255_p4)
}
 0x1ea   :  { %s269_s28 = smov [#allocation7]  }
 0x1eb   :  { %186 = dma.smem_to_hbm %s269_s28, 16, %s351_s3, [#allocation4]  }
 0x1ec   :  { %263 = dma.done.wait [#allocation4], 16  }
 0x1ed   :  { %264 = vsyncadd [#allocation4], 4294967280 }
 0x1ee   :  { %190 = sfence }
 0x1ef   :  { %191 = vsyncpa [#allocation3], 1 }
 0x1f0   :  { %192 = vsyncpa [#allocation6], 1 }
 0x1f1   :  { %193 = vsyncpa [#allocation4], 1 }

</bundles_post_ra>
